<compile_context>
chip_gen: v7x
topology: tpu7x:2x2x1
jax: 0.10.0
libtpu: 0.0.40
codegen_flags: <defaults>
</compile_context>

<pallas_src>
import math
import numpy as np
import jax
import jax.numpy as jnp
from jax.experimental import pallas as pl
from jax.experimental.pallas import tpu as pltpu


def _round_up(x, m):
    return ((x + m - 1) // m) * m


# ------------------------------ Pallas kernel -------------------------------
def _make_kernel(arity, n_pad, qsym_terms, compute_dtype):
    """qsym_terms: list of (a, b, coef) with coef = Q[a,a] for a==b, Q[a,b]+Q[b,a] for a<b.
    Coefficients are Python floats -> compiled in as constants (no SMEM traffic)."""

    def quad_dense_kernel(x_ref, w_ref, b_ref, out_ref):
        # x:   [TB, K]                              raw input tile (cast in-register)
        # w:   [K, (arity+1)*n_pad]  compute_dtype  arity groups + folded-linear group
        # b:   [1, (arity+1)*n_pad]  f32            per-group bias; lin group also holds +c
        # out: [TB, n_pad]                          lane-dense; real neurons = first O lanes
        z = jnp.dot(x_ref[...].astype(compute_dtype), w_ref[...],
                    preferred_element_type=jnp.float32) + b_ref[...]
        zg = [z[:, g * n_pad:(g + 1) * n_pad] for g in range(arity + 1)]
        acc = zg[arity]                          # w.v + b_lin + c  (came out of the MXU)
        for a, b, q in qsym_terms:               # v^T Q v, symmetrised
            acc = acc + q * (zg[a] * zg[b])
        out_ref[...] = acc.astype(out_ref.dtype)

    return quad_dense_kernel


# ------------------------- host-side (one-time) packing ---------------------
def _pack_params(weight, bias, quad_Q, quad_w, quad_c, arity, out_features, n_pad):
    """numpy glue, executed once: permute W (PyTorch row order i*arity+a) into arity-major
    lane layout, zero-pad the neuron axis to n_pad lanes, append a folded-linear column
    group, and build the matching [1, lanes] bias row (lin group absorbs w.b + c)."""
    w = np.asarray(weight, np.float32)                      # [arity*O, f_in]
    b = np.asarray(bias, np.float32)                        # [arity*O]
    Q = np.asarray(quad_Q, np.float32)                      # [arity, arity]
    lw = np.asarray(quad_w, np.float32)                     # [arity]
    c = float(np.asarray(quad_c))
    f_in = w.shape[1]
    O = out_features
    w_r = w.reshape(O, arity, f_in)                         # [O, a, f_in]
    b_r = b.reshape(O, arity)                               # [O, a]

    n_groups = arity + 1
    slab = np.zeros((n_groups, n_pad, f_in), np.float32)
    brow = np.zeros((n_groups, n_pad), np.float32)
    slab[:arity, :O, :] = np.transpose(w_r, (1, 0, 2))      # group a, lane i = W[i*arity+a]
    brow[:arity, :O] = b_r.T
    slab[arity, :O, :] = np.einsum('a,oaf->of', lw, w_r)    # W_lin = sum_a w_a * W_a
    brow[arity, :O] = b_r @ lw + c                          # b_lin = sum_a w_a * b_a + c

    slab2d = np.ascontiguousarray(slab.reshape(n_groups * n_pad, f_in).T)  # [f_in, lanes]
    brow2d = brow.reshape(1, n_groups * n_pad)

    qsym = []
    for a in range(arity):
        for bb in range(a, arity):
            coef = Q[a, a] if a == bb else Q[a, bb] + Q[bb, a]
            qsym.append((a, bb, float(coef)))
    return slab2d, brow2d, qsym


def make_quadratic_dense_forward(weight, bias, quad_Q, quad_w, quad_c,
                                 arity, out_features, *,
                                 n_pad=128, max_batch_tile=1024,
                                 compute_dtype=jnp.bfloat16,
                                 out_dtype=jnp.float32):
    """Builds the forward once (all static packing hoisted out of the hot path)."""
    f_in = int(np.asarray(weight).shape[1])
    n_lanes = (arity + 1) * n_pad

    slab_np, brow_np, qsym = _pack_params(weight, bias, quad_Q, quad_w, quad_c,
                                          arity, out_features, n_pad)
    slab = jnp.asarray(slab_np, dtype=compute_dtype)        # [f_in, n_lanes]
    brow = jnp.asarray(brow_np, dtype=jnp.float32)          # [1, n_lanes]
    kernel = _make_kernel(arity, n_pad, qsym, compute_dtype)

    def fwd(x, slab, brow):
        b = x.shape[0]
        b_pad = _round_up(b, 8)
        tb = min(b_pad, max_batch_tile)
        if b_pad // tb < 2 and b_pad >= 16:
            tb = _round_up(b_pad // 2, 8)    # >=2 grid steps so v7x's 2nd TC gets work
        b_pad = _round_up(b_pad, tb)
        if b_pad != b:                       # only pads when batch isn't tile-aligned
            x = jnp.pad(x, ((0, b_pad - b), (0, 0)))

        out = pl.pallas_call(
            kernel,
            out_shape=jax.ShapeDtypeStruct((b_pad, n_pad), out_dtype),
            grid_spec=pltpu.PrefetchScalarGridSpec(
                num_scalar_prefetch=0,
                grid=(b_pad // tb,),
                in_specs=[
                    pl.BlockSpec((tb, f_in), lambda i: (i, 0)),
                    # constant index_maps -> slab/bias fetched once, VMEM-resident
                    pl.BlockSpec((f_in, n_lanes), lambda i: (0, 0)),
                    pl.BlockSpec((1, n_lanes), lambda i: (0, 0)),
                ],
                out_specs=pl.BlockSpec((tb, n_pad), lambda i: (i, 0)),
            ),
            compiler_params=pltpu.CompilerParams(
                dimension_semantics=("parallel",),
            ),
            # TODO(synk): if f_in grows large, set vmem_limit_bytes and/or split K on a
            # second "arbitrary" grid axis with an accumulator (v7x VMEM is 64 MiB).
        )(x, slab, brow)

        # forward returns (all_outputs, in2cells); collect=False -> in2cells is None.
        # TODO(synk): collect=True would need all_inputs as a second kernel output.
        return out[:b, :out_features], None

    jit_fwd = jax.jit(fwd)
    return lambda x: jit_fwd(x, slab, brow)


# ------------------------------- reference ----------------------------------
def reference_forward(x, weight, bias, quad_Q, quad_w, quad_c, arity, out_features):
    z = jnp.dot(x, weight.T, precision=jax.lax.Precision.HIGHEST) + bias
    outs = []
    for i in range(out_features):
        v = z[:, i * arity:(i + 1) * arity]                  # [B, arity]
        o = jnp.sum((v @ quad_Q) * v, axis=-1) + v @ quad_w + quad_c
        outs.append(o[:, None])
    return jnp.concatenate(outs, axis=-1)


# --------------------------------- main --------------------------------------
if __name__ == "__main__":
    BATCH, IN_FEATURES, OUT_FEATURES, ARITY = 8, 32, 16, 2
    NUM_CELL_TYPES = 2

    key = jax.random.PRNGKey(0)
    k_x, k_w, k_b, k_q, k_l, k_c = jax.random.split(key, 6)

    # mirrors the module attribute (unused by the forward itself)
    cell_indices = np.repeat(np.arange(NUM_CELL_TYPES), OUT_FEATURES // NUM_CELL_TYPES)

    # outer linear params (kaiming_uniform_(a=sqrt(5)) -> bound = 1/sqrt(fan_in))
    w_bound = 1.0 / math.sqrt(IN_FEATURES)
    weight = jax.random.uniform(k_w, (ARITY * OUT_FEATURES, IN_FEATURES),
                                jnp.float32, -w_bound, w_bound)
    bias = jax.random.uniform(k_b, (ARITY * OUT_FEATURES,), jnp.float32, -w_bound, w_bound)

    # shared quadratic cell coefficients: cell(v) = v^T Q v + w.v + c
    quad_Q = jax.random.uniform(k_q, (ARITY, ARITY), jnp.float32, -1.0, 1.0)
    quad_w = jax.random.uniform(k_l, (ARITY,), jnp.float32, -1.0, 1.0)
    quad_c = jax.random.uniform(k_c, (), jnp.float32, -1.0, 1.0)

    x = jax.random.normal(k_x, (BATCH, IN_FEATURES), jnp.float32)

    ref = reference_forward(x, weight, bias, quad_Q, quad_w, quad_c, ARITY, OUT_FEATURES)

    # 1) f32 compute path: exact module semantics, tight tolerance.
    fwd_f32 = make_quadratic_dense_forward(weight, bias, quad_Q, quad_w, quad_c,
                                           ARITY, OUT_FEATURES,
                                           compute_dtype=jnp.float32)
    out_f32, in2cells_f32 = fwd_f32(x)
    out_f32 = jax.block_until_ready(out_f32)
    np.testing.assert_allclose(np.asarray(out_f32), np.asarray(ref), rtol=1e-5, atol=2e-5)

    # 2) default perf path: bf16 MXU inputs / f32 epilogue.  Tolerance is looser because
    #    the quadratic amplifies the bf16 rounding of z (per review, re-validated here).
    forward = make_quadratic_dense_forward(weight, bias, quad_Q, quad_w, quad_c,
                                           ARITY, OUT_FEATURES)
    out, in2cells = forward(x)
    out = jax.block_until_ready(out)
    np.testing.assert_allclose(np.asarray(out), np.asarray(ref), rtol=5e-2, atol=5e-2)

    assert out.shape == (BATCH, OUT_FEATURES)
    assert in2cells is None          # collect=False path
    print("KERNEL_OK")
</pallas_src>

<mosaic_0001>
module attributes {stable_mosaic.version = 11 : i64} {
  func.func @quad_dense_kernel(%arg0: i32, %arg1: memref<8x32xf32, #tpu.memory_space<vmem>>, %arg2: memref<32x384xf32, #tpu.memory_space<vmem>>, %arg3: memref<1x384xf32, #tpu.memory_space<vmem>>, %arg4: memref<8x128xf32, #tpu.memory_space<vmem>>) attributes {dimension_semantics = [#tpu.dimension_semantics<parallel>], iteration_bounds = array<i64: 1>, scalar_prefetch = 0 : i64, scratch_operands = 0 : i64, tpu.core_type = #tpu.core_type<tc>, window_params = [{transform_indices = @transform_0, window_bounds = array<i64: 8, 32>}, {pipeline_mode = #tpu.pipeline_mode<synchronous>, transform_indices = @transform_1, window_bounds = array<i64: 32, 384>}, {pipeline_mode = #tpu.pipeline_mode<synchronous>, transform_indices = @transform_2, window_bounds = array<i64: 1, 384>}, {transform_indices = @transform_3, window_bounds = array<i64: 8, 128>}]} {
    %c0 = arith.constant 0 : index
    %c0_0 = arith.constant 0 : index
    %0 = vector.load %arg1[%c0, %c0_0] : memref<8x32xf32, #tpu.memory_space<vmem>>, vector<8x32xf32>
    %c0_1 = arith.constant 0 : index
    %c0_2 = arith.constant 0 : index
    %1 = vector.load %arg2[%c0_1, %c0_2] : memref<32x384xf32, #tpu.memory_space<vmem>>, vector<32x384xf32>
    %cst = arith.constant dense<0.000000e+00> : vector<8x384xf32>
    %2 = tpu.matmul %0, %1, %cst {dimension_numbers = #tpu.dot_dimension_numbers<[1], [0], [0], [1], [0, 0, 1, 1], [], []>} : vector<8x32xf32>, vector<32x384xf32>, vector<8x384xf32> -> vector<8x384xf32>
    %c0_3 = arith.constant 0 : index
    %c0_4 = arith.constant 0 : index
    %3 = vector.load %arg3[%c0_3, %c0_4] : memref<1x384xf32, #tpu.memory_space<vmem>>, vector<1x384xf32>
    %4 = vector.broadcast %3 : vector<1x384xf32> to vector<8x384xf32>
    %5 = arith.addf %2, %4 : vector<8x384xf32>
    %6 = vector.extract_strided_slice %5 {offsets = [0, 0], sizes = [8, 128], strides = [1, 1]} : vector<8x384xf32> to vector<8x128xf32>
    %7 = vector.extract_strided_slice %5 {offsets = [0, 128], sizes = [8, 128], strides = [1, 1]} : vector<8x384xf32> to vector<8x128xf32>
    %8 = vector.extract_strided_slice %5 {offsets = [0, 256], sizes = [8, 128], strides = [1, 1]} : vector<8x384xf32> to vector<8x128xf32>
    %9 = arith.mulf %6, %6 : vector<8x128xf32>
    %cst_5 = arith.constant -0.466021061 : f32
    %10 = vector.broadcast %cst_5 : f32 to vector<8x128xf32>
    %11 = arith.mulf %10, %9 : vector<8x128xf32>
    %12 = arith.addf %8, %11 : vector<8x128xf32>
    %13 = arith.mulf %6, %7 : vector<8x128xf32>
    %cst_6 = arith.constant 1.37534642 : f32
    %14 = vector.broadcast %cst_6 : f32 to vector<8x128xf32>
    %15 = arith.mulf %14, %13 : vector<8x128xf32>
    %16 = arith.addf %12, %15 : vector<8x128xf32>
    %17 = arith.mulf %7, %7 : vector<8x128xf32>
    %cst_7 = arith.constant -0.580916882 : f32
    %18 = vector.broadcast %cst_7 : f32 to vector<8x128xf32>
    %19 = arith.mulf %18, %17 : vector<8x128xf32>
    %20 = arith.addf %16, %19 : vector<8x128xf32>
    %c0_8 = arith.constant 0 : index
    %c0_9 = arith.constant 0 : index
    %21 = vector.load %arg4[%c0_8, %c0_9] : memref<8x128xf32, #tpu.memory_space<vmem>>, vector<8x128xf32>
    tpu.vector_store %arg4[%c0_8, %c0_9], %20 {strides = array<i32>} : memref<8x128xf32, #tpu.memory_space<vmem>>, vector<8x128xf32>,
    return
  }
  func.func @transform_0(%arg0: i32) -> (i32, i32) {
    %c0_i32 = arith.constant 0 : i32
    %c0_i32_0 = arith.constant 0 : i32
    return %arg0, %c0_i32 : i32, i32
  }
  func.func @transform_1(%arg0: i32) -> (i32, i32) {
    %c0_i32 = arith.constant 0 : i32
    %c0_i32_0 = arith.constant 0 : i32
    %c0_i32_1 = arith.constant 0 : i32
    return %c0_i32, %c0_i32_0 : i32, i32
  }
  func.func @transform_2(%arg0: i32) -> (i32, i32) {
    %c0_i32 = arith.constant 0 : i32
    %c0_i32_0 = arith.constant 0 : i32
    %c0_i32_1 = arith.constant 0 : i32
    return %c0_i32, %c0_i32_0 : i32, i32
  }
  func.func @transform_3(%arg0: i32) -> (i32, i32) {
    %c0_i32 = arith.constant 0 : i32
    %c0_i32_0 = arith.constant 0 : i32
    return %arg0, %c0_i32 : i32, i32
  }
}

</mosaic_0001>

<bundles_post_ra>
// kernel: fwd.1
= control target key start
LH: loop header
LB: loop body
LE: loop exit
PB: predicated region body
PF: predicated region fallthrough
CT: control target
= control target key end

     0   :  { %8 = vsyncpa [#allocation3], 0  ;;  %s428_s0 = inlined_call_operand.hbm [shape: f32[8,32], index: 0, kind: input, shape index: {}]   ;;  %s429_s1 = inlined_call_operand.hbm [shape: f32[32,384], index: 1, kind: input, shape index: {}]   ;;  %s430_s2 = inlined_call_operand.vmem [shape: f32[1,384], index: 2, kind: input, shape index: {}]   ;;  %s431_s3 = inlined_call_operand.hbm [shape: f32[8,128], index: 3, kind: output, shape index: {}]  }
   0x1   :  { %9 = vsyncpa [#allocation6], 0 }
   0x2   :  { %10 = vsyncpa [#allocation4], 0  ;;  %s354_s12 = smov [#allocation2]   ;;  %s355_s14 = smov [#allocation5]  }
   0x3   :  { %s17_s13 = sshll.u32 %s354_s12, 4  ;;  %s26_s15 = sshll.u32 %s355_s14, 4  ;;  %s18_s13 = int_to_ptr.vmem [resolvable:$true] %s17_s13  ;;  %s382_s15 = int_to_ptr.vmem [resolvable:$true] %s26_s15 }
   0x4   :  { %s282_s18 = scalar_lea.hbm %s428_s0, 128 }
   0x5   :  { %p283_p0 = scmp.ne.s32.totalorder %s428_s0, %s282_s18  ;;  %p286_p1 = scmp.lt.u32.totalorder %s282_s18, %s428_s0 }
   0x7   :  { %p288_p2 = pnand %p286_p1, %p283_p0 }
   0x9   :  { %291 = shalt.err (!%p288_p2)
}
   0xa   :  { %s292_s23 = scalar_lea.vmem %s18_s13, 128  ;;  %p297_p4 = scmp.lt.s32.totalorder %s18_s13, %s18_s13 }
   0xb   :  { %p293_p3 = scmp.ne.s32.totalorder %s18_s13, %s292_s23  ;;  %p298_p5 = scmp.lt.s32.totalorder %s292_s23, %s292_s23 }
   0xd   :  { %p299_p6 = por %p298_p5, %p297_p4 }
   0xf   :  { %p300_p7 = pnand %p299_p6, %p293_p3 }
  0x11   :  { %303 = shalt.err (!%p300_p7)
}
  0x12   :  { %20 = dma.hbm_to_vmem [thread:$0]  %s428_s0, 128, %s18_s13, [#allocation3]  }
  0x13   :  { %s304_s28 = scalar_lea.hbm %s429_s1, 1536 }
  0x14   :  { %p305_p8 = scmp.ne.s32.totalorder %s429_s1, %s304_s28  ;;  %p308_p9 = scmp.lt.u32.totalorder %s304_s28, %s429_s1 }
  0x16   :  { %p310_p10 = pnand %p308_p9, %p305_p8 }
  0x18   :  { %313 = shalt.err (!%p310_p10)
}
  0x19   :  { %s314_s6 = scalar_lea.vmem %s382_s15, 1536  ;;  %p319_p12 = scmp.lt.s32.totalorder %s382_s15, %s382_s15 }
  0x1a   :  { %p315_p11 = scmp.ne.s32.totalorder %s382_s15, %s314_s6  ;;  %p320_p13 = scmp.lt.s32.totalorder %s314_s6, %s314_s6 }
  0x1c   :  { %p321_p0 = por %p320_p13, %p319_p12 }
  0x1e   :  { %p322_p1 = pnand %p321_p0, %p315_p11 }
  0x20   :  { %325 = shalt.err (!%p322_p1)
}
  0x21   :  { %s356_s0 = smov 384   ;;  %s357_s7 = smov 24  }
  0x22   :  { %32 = dma.hbm_to_vmem [thread:$0]  %s429_s1, 1536, %s382_s15, [#allocation6], %s356_s0, %s356_s0, %s357_s7  }
  0x23   :  { %348 = dma.done.wait [#allocation3], 128  }
  0x24   :  { %349 = vsyncadd [#allocation3], 4294967168 }
  0x25   :  { %350 = dma.done.wait [#allocation6], 1536  }
  0x26   :  { %351 = vsyncadd [#allocation6], 4294965760  ;;  %v358_v0 = vmov 0.0|0.0   ;;  %v359_v1 = vmov 0.0   ;;  %vm360_vm0 = vmmov 0   ;;  %v43_v2 = vld [vmem:[#allocation5 + $0x8] sm:$0xff]  ;;  %v56_v21 = vlaneseq }
  0x27   :  { %268 = vmatprep.subr.bf16.mxu1 %v358_v0  ;;  %139 = vmatprep.mubr.f32.mxu0 %v359_v1  ;;  %v46_v3 = vld [vmem:[#allocation5 + $0x20] sm:$0xff]  ;;  %v45_v6 = vld [vmem:[#allocation5 + $0x18] sm:$0xff]  ;;  %v52_v8 = vld [vmem:[#allocation5 + $0x50] sm:$0xff]  ;;  %vm71_vm1 = vcmask 261120   ;;  %s361_s11 = smov [#allocation7]  }
  0x28   :  { %257 = vmatprep.mubr.msk.f32.mxu1 %vm360_vm0, %v359_v1  ;;  %v42_v4 = vld [vmem:[#allocation5] sm:$0xff]  ;;  %v260_v5 = vpack.c.bf16 %v46_v3, %v43_v2  ;;  %v49_v7 = vld [vmem:[#allocation5 + $0x38] sm:$0xff]  ;;  %v44_v11 = vld [vmem:[#allocation5 + $0x10] sm:$0xff]  ;;  %v57_v22 = vshrl.u32 %v56_v21, 7 }
  0x29   :  { %v262_v9 = vpack.c.bf16 %v45_v6, %v42_v4  ;;  %v264_v10 = vpack.c.bf16 %v52_v8, %v49_v7  ;;  %v47_v12 = vld [vmem:[#allocation5 + $0x28] sm:$0xff]  ;;  %v48_v13 = vld [vmem:[#allocation5 + $0x30] sm:$0xff]  ;;  %v50_v16 = vld [vmem:[#allocation5 + $0x40] sm:$0xff] }
  0x2a   :  { %261 = vmatprep.subr.bf16.mxu0 %v260_v5  ;;  %v269_v14 = vpack.c.bf16 %v47_v12, %v44_v11  ;;  %v51_v15 = vld [vmem:[#allocation5 + $0x48] sm:$0xff]  ;;  %v53_v18 = vld [vmem:[#allocation5 + $0x58] sm:$0xff]  ;;  %v58_v23 = vsub.s32 0, %v57_v22  ;;  %v62_v25 = vsub.s32 1, %v57_v22  ;;  %v66_v26 = vsub.s32 2, %v57_v22 }
  0x2b   :  { %263 = vmatpush1.bf16.msra.mxu0 %v262_v9  ;;  %v266_v17 = vpack.c.bf16 %v51_v15, %v48_v13  ;;  %v272_v19 = vpack.c.bf16 %v53_v18, %v50_v16  ;;  %v41_v20 = vld [vmem:[#allocation2] sm:$0xff] }
  0x2c   :  { %265 = vmatprep.subr.bf16.mxu0 %v264_v10  ;;  %270 = vmatpush3.bf16.msra.mxu1 %v269_v14  ;;  %v54_v24 = vld [vmem:[%s430_s2] sm:$0x7]  ;;  %s232_s2 = sshll.u32 %s361_s11, 4  ;;  %s233_s2 = int_to_ptr.vmem [resolvable:$true] %s232_s2 }
  0x2d   :  { %271 = vmatprep.subr.bf16.mxu1 %v358_v0  ;;  %v59_v27 = vrot.slane %v54_v24, %v58_v23  ;;  %v63_v28 = vrot.slane %v54_v24, %v62_v25  ;;  %v67_v29 = vrot.slane %v54_v24, %v66_v26  ;;  %s326_s12 = scalar_lea.vmem %s233_s2, 128  ;;  %p331_p3 = scmp.lt.s32.totalorder %s233_s2, %s233_s2 }
  0x2e   :  { %p327_p2 = scmp.ne.s32.totalorder %s233_s2, %s326_s12  ;;  %p332_p4 = scmp.lt.s32.totalorder %s326_s12, %s326_s12 }
  0x2f   :  { %267 = vmatpush1.bf16.msra.mxu0 %v266_v17 }
  0x30   :  { %273 = vmatpush3.bf16.msra.mxu1 %v272_v19  ;;  %p333_p5 = por %p332_p4, %p331_p3 }
  0x32   :  { %242 = vmatmul.mubr.msk.f32.vlgmr.msra.gmra.mrb[0].mxu0 %vm71_vm1, %v41_v20  ;;  %p334_p6 = pnand %p333_p5, %p327_p2 }
  0x33   :  { %258 = vmatmul.mubr.msk.f32.vlgmr.msra.gmra.mrb[0].mxu1 %vm71_vm1, %v41_v20 }
 0x105   :  { %v141_v30 = vpop.f32.mrb[0].mxu0 }
 0x106   :  { %v142_v31 = vadd.f32 %v141_v30, %v59_v27  ;;  %v143_v32 = vpop.f32.mrb[1].mxu0  ;;  %v212_v33 = vpop.f32.mrb[0].mxu1 }
 0x107   :  { %v144_v34 = vadd.f32 %v143_v32, %v63_v28  ;;  %v259_v35 = vpop.f32.mrb[1].mxu1  ;;  %v213_v37 = vadd.f32 %v212_v33, %v67_v29 }
 0x108   :  { %v216_v36 = vmul.f32 %v142_v31, %v142_v31 }
 0x109   :  { %v219_v38 = vmul.f32 %v144_v34, %v142_v31  ;;  %v222_v40 = vmul.f32 %v144_v34, %v144_v34 }
 0x10a   :  { %v217_v39 = vmul.f32 -0.46602106, %v216_v36 }
 0x10b   :  { %v220_v41 = vmul.f32 1.3753464, %v219_v38  ;;  %v223_v43 = vmul.f32 -0.5809169, %v222_v40 }
 0x10c   :  { %v218_v42 = vadd.f32 %v217_v39, %v213_v37 }
 0x10e   :  { %v221_v44 = vadd.f32 %v220_v41, %v218_v42 }
 0x110   :  { %v224_v45 = vadd.f32 %v223_v43, %v221_v44 }
 0x112   :  { %225 = vst [vmem:[#allocation7] sm:$0xff] %v224_v45 }
 0x113   :  { %337 = shalt.err (!%p334_p6)
}
 0x114   :  { %s338_s15 = scalar_lea.hbm %s431_s3, 128 }
 0x115   :  { %p339_p7 = scmp.ne.s32.totalorder %s431_s3, %s338_s15  ;;  %p342_p8 = scmp.lt.u32.totalorder %s338_s15, %s431_s3 }
 0x117   :  { %p344_p9 = pnand %p342_p8, %p339_p7 }
 0x119   :  { %347 = shalt.err (!%p344_p9)
}
 0x11a   :  { %235 = dma.vmem_to_hbm [thread:$0]  %s233_s2, 128, %s431_s3, [#allocation4]  }
 0x11b   :  { %352 = dma.done.wait [#allocation4], 128  }
 0x11c   :  { %353 = vsyncadd [#allocation4], 4294967168 }
 0x11d   :  { %239 = vsyncpa [#allocation3], 1 }
 0x11e   :  { %240 = vsyncpa [#allocation6], 1 }
 0x11f   :  { %241 = vsyncpa [#allocation4], 1 }

</bundles_post_ra>
